<compile_context>
chip_gen: v6e
topology: v6e:2x2x1
jax: 0.10.0
libtpu: 0.0.40
codegen_flags: <defaults>
</compile_context>

<pallas_src>
import math

import jax
import jax.numpy as jnp
from jax.experimental import pallas as pl
from jax.experimental.pallas import tpu as pltpu

_TM_MAX = 1024       # max batch-tile rows (multiple of 8); v5e/v6e measured
                     # roofline fraction is flat past 1024 and tiles stay small
_TINY_B = 64         # below this, XLA's fused GEMV beats kernel launch cost


def _round_up(x, m):
    return (x + m - 1) // m * m


def _vmem_tile_bytes(rows, cols, itemsize):
    # VMEM layout pads the last two dims to (sublane, lane) = (8, 128) tiles.
    return _round_up(rows, 8) * _round_up(cols, 128) * itemsize


def _choose_tm(B):
    if B < 256:
        # Small batch: one whole-B block (block == full dim is always legal,
        # even when B is not a multiple of 8).
        return B
    # Target >= 4 grid steps so the feature-stream DMA overlaps the matmul and
    # both v7x TensorCores get work; cap the tile at _TM_MAX rows for large B.
    return min(_TM_MAX, _round_up(pl.cdiv(B, 4), 8))


def _linear_kernel(x_ref, w_ref, b_ref, o_ref):
    # (TM, D) @ (D, C) on the MXU with f32 accumulation; bias add rides the
    # VPU.  w_ref / b_ref use a constant index_map so the same block is reused
    # across the whole batch grid.  Output stores at true width C are masked
    # vst.msk, but the writeback DMA stays contiguous (row-major (B, C)).
    acc = jnp.dot(x_ref[...], w_ref[...], preferred_element_type=jnp.float32)
    o_ref[...] = (acc + b_ref[...]).astype(o_ref.dtype)


def rotate_cls_forward(features, weight_dc, bias_c, *, force_pallas=False):
    """Pallas equivalent of BaseModel.rotate_cls_layer(features).

    features:  (B, D) float32 or bfloat16 (consumed in its native dtype)
    weight_dc: (D, C)          (PyTorch nn.Linear weight.T)
    bias_c:    (C,)   float32
    returns:   (B, C) in features.dtype
    """
    B, D = features.shape
    D2, C = weight_dc.shape
    assert D == D2
    out_dtype = features.dtype

    # Weight is tiny (D*C elems): cast it to the activation dtype so the MXU
    # operands match; bias stays f32 and is added to the f32 accumulator.
    x = features
    w = weight_dc.astype(x.dtype)
    b = bias_c.astype(jnp.float32).reshape(1, C)

    # Tiny-shape dispatch: let XLA emit the GEMV; kernel launch + pipeline
    # setup would dominate the few KiB of work.
    if B <= _TINY_B and not force_pallas:
        return (jnp.dot(x, w, preferred_element_type=jnp.float32)
                + b).astype(out_dtype)

    TM = _choose_tm(B)
    grid = (pl.cdiv(B, TM),)

    # VMEM budget: Pallas double-buffers every input/output spec, including
    # the constant-index weight/bias, so count 2x for all of them.
    isz = jnp.dtype(x.dtype).itemsize
    wsz = jnp.dtype(w.dtype).itemsize
    osz = jnp.dtype(out_dtype).itemsize
    vmem_needed = (2 * _vmem_tile_bytes(TM, D, isz)      # x tiles
                   + 2 * _vmem_tile_bytes(TM, C, osz)    # out tiles
                   + 2 * _vmem_tile_bytes(D, C, wsz)     # weight (resident)
                   + 2 * _vmem_tile_bytes(1, C, 4))      # bias   (resident)
    # Right-sized request: estimate + a few MiB headroom, capped well under
    # v7x's 64 MiB physical VMEM (shared by both TCs when the grid is parallel).
    vmem_limit = min(vmem_needed + (6 << 20), 56 << 20)
    assert vmem_needed < vmem_limit, "tile budget exceeds VMEM headroom"
    # TODO(synk): if real subclasses make D very large, add a K grid axis with
    # an f32 VMEM accumulator (init/writeback via pl.when) instead of keeping
    # the whole (D, C) weight resident.

    cost = pl.CostEstimate(
        flops=2 * B * D * C,
        transcendentals=0,
        bytes_accessed=(x.size * isz + w.size * wsz + b.size * 4
                        + B * C * osz),
    )

    out = pl.pallas_call(
        _linear_kernel,
        out_shape=jax.ShapeDtypeStruct((B, C), out_dtype),
        grid=grid,
        in_specs=[
            pl.BlockSpec((TM, D), lambda i: (i, 0)),   # streamed batch tiles
            pl.BlockSpec((D, C), lambda i: (0, 0)),    # weight: reused block
            pl.BlockSpec((1, C), lambda i: (0, 0)),    # bias:   reused block
        ],
        out_specs=pl.BlockSpec((TM, C), lambda i: (i, 0)),
        compiler_params=pltpu.CompilerParams(
            dimension_semantics=("parallel",),         # rows independent
            vmem_limit_bytes=vmem_limit,
        ),
        cost_estimate=cost,
    )(x, w, b)

    return out


def _make_linear_params(key, last_dim, num_classes):
    # nn.Linear default init: U(-1/sqrt(fan_in), 1/sqrt(fan_in)).
    k_w, k_b = jax.random.split(key)
    bound = 1.0 / math.sqrt(last_dim)
    weight_cd = jax.random.uniform(
        k_w, (num_classes, last_dim), jnp.float32, minval=-bound, maxval=bound)
    bias_c = jax.random.uniform(
        k_b, (num_classes,), jnp.float32, minval=-bound, maxval=bound)
    return weight_cd, bias_c


if __name__ == "__main__":
    key = jax.random.PRNGKey(0)
    k_small, k_big, k_params = jax.random.split(key, 3)

    # --- small shapes implied by the module: last_dim=32, num_classes=4 ------
    batch, last_dim, num_classes = 8, 32, 4
    weight_cd, bias_c = _make_linear_params(k_params, last_dim, num_classes)
    features = jax.random.normal(k_small, (batch, last_dim), jnp.float32)
    ref = features @ weight_cd.T + bias_c

    # Pallas path (forced, so the kernel itself is exercised at small shapes).
    out = jax.block_until_ready(
        rotate_cls_forward(features, weight_cd.T, bias_c, force_pallas=True))
    assert out.shape == (batch, num_classes)
    assert jnp.allclose(out, ref, atol=1e-5, rtol=1e-5)

    # Default tiny-shape dispatch (XLA GEMV) matches too.
    out_x = jax.block_until_ready(
        rotate_cls_forward(features, weight_cd.T, bias_c))
    assert jnp.allclose(out_x, ref, atol=1e-5, rtol=1e-5)

    # --- larger tiled case: 4-step batch grid, true-width (unpadded) output --
    batch2, last_dim2, num_classes2 = 1024, 256, 4
    w2_cd, b2_c = _make_linear_params(k_params, last_dim2, num_classes2)
    feats2 = jax.random.normal(k_big, (batch2, last_dim2), jnp.float32)
    ref2 = feats2 @ w2_cd.T + b2_c

    out2 = jax.block_until_ready(rotate_cls_forward(feats2, w2_cd.T, b2_c))
    assert out2.shape == (batch2, num_classes2)
    assert jnp.allclose(out2, ref2, atol=1e-4, rtol=1e-4)

    # --- bf16 features produced upstream (no wrapper-side pre-cast of x) -----
    feats2_bf16 = feats2.astype(jnp.bfloat16)   # simulates a bf16 backbone
    out3 = jax.block_until_ready(
        rotate_cls_forward(feats2_bf16, w2_cd.T, b2_c))
    assert out3.shape == (batch2, num_classes2)
    assert out3.dtype == jnp.bfloat16
    assert jnp.allclose(out3.astype(jnp.float32), ref2, atol=5e-2, rtol=5e-2)

    print("KERNEL_OK")
</pallas_src>

<mosaic_0001>
module attributes {stable_mosaic.version = 11 : i64} {
  func.func @_linear_kernel(%arg0: i32, %arg1: memref<8x32xf32, #tpu.memory_space<vmem>>, %arg2: memref<32x4xf32, #tpu.memory_space<vmem>>, %arg3: memref<1x4xf32, #tpu.memory_space<vmem>>, %arg4: memref<8x4xf32, #tpu.memory_space<vmem>>) attributes {dimension_semantics = [#tpu.dimension_semantics<parallel>], iteration_bounds = array<i64: 1>, scalar_prefetch = 0 : i64, scratch_operands = 0 : i64, tpu.core_type = #tpu.core_type<tc>, window_params = [{transform_indices = @transform_0, window_bounds = array<i64: 8, 32>}, {pipeline_mode = #tpu.pipeline_mode<synchronous>, transform_indices = @transform_1, window_bounds = array<i64: 32, 4>}, {pipeline_mode = #tpu.pipeline_mode<synchronous>, transform_indices = @transform_2, window_bounds = array<i64: 1, 4>}, {transform_indices = @transform_3, window_bounds = array<i64: 8, 4>}]} {
    %c0 = arith.constant 0 : index
    %c0_0 = arith.constant 0 : index
    %0 = vector.load %arg1[%c0, %c0_0] : memref<8x32xf32, #tpu.memory_space<vmem>>, vector<8x32xf32>
    %c0_1 = arith.constant 0 : index
    %c0_2 = arith.constant 0 : index
    %1 = vector.load %arg2[%c0_1, %c0_2] : memref<32x4xf32, #tpu.memory_space<vmem>>, vector<32x4xf32>
    %cst = arith.constant dense<0.000000e+00> : vector<8x4xf32>
    %2 = tpu.matmul %0, %1, %cst {dimension_numbers = #tpu.dot_dimension_numbers<[1], [0], [0], [1], [0, 0, 1, 1], [], []>} : vector<8x32xf32>, vector<32x4xf32>, vector<8x4xf32> -> vector<8x4xf32>
    %c0_3 = arith.constant 0 : index
    %c0_4 = arith.constant 0 : index
    %3 = vector.load %arg3[%c0_3, %c0_4] : memref<1x4xf32, #tpu.memory_space<vmem>>, vector<1x4xf32>
    %4 = vector.broadcast %3 : vector<1x4xf32> to vector<8x4xf32>
    %5 = arith.addf %2, %4 : vector<8x4xf32>
    %c0_5 = arith.constant 0 : index
    %c0_6 = arith.constant 0 : index
    %6 = vector.load %arg4[%c0_5, %c0_6] : memref<8x4xf32, #tpu.memory_space<vmem>>, vector<8x4xf32>
    tpu.vector_store %arg4[%c0_5, %c0_6], %5 {strides = array<i32>} : memref<8x4xf32, #tpu.memory_space<vmem>>, vector<8x4xf32>,
    return
  }
  func.func @transform_0(%arg0: i32) -> (i32, i32) {
    %c0_i32 = arith.constant 0 : i32
    %c0_i32_0 = arith.constant 0 : i32
    return %arg0, %c0_i32 : i32, i32
  }
  func.func @transform_1(%arg0: i32) -> (i32, i32) {
    %c0_i32 = arith.constant 0 : i32
    %c0_i32_0 = arith.constant 0 : i32
    %c0_i32_1 = arith.constant 0 : i32
    return %c0_i32, %c0_i32_0 : i32, i32
  }
  func.func @transform_2(%arg0: i32) -> (i32, i32) {
    %c0_i32 = arith.constant 0 : i32
    %c0_i32_0 = arith.constant 0 : i32
    %c0_i32_1 = arith.constant 0 : i32
    return %c0_i32, %c0_i32_0 : i32, i32
  }
  func.func @transform_3(%arg0: i32) -> (i32, i32) {
    %c0_i32 = arith.constant 0 : i32
    %c0_i32_0 = arith.constant 0 : i32
    return %arg0, %c0_i32 : i32, i32
  }
}

</mosaic_0001>

<bundles_post_ra>
// kernel: tpu_custom_call.1
= control target key start
LH: loop header
LB: loop body
LE: loop exit
PB: predicated region body
PF: predicated region fallthrough
CT: control target
= control target key end

     0   :  { %v126_v0 = vmov 0.0   ;;  %vm127_vm0 = vmmov 0   ;;  %vm26_vm1 = vcmask 261120   ;;  %vm100_vm2 = vcmask 31744   ;;  %s169_s1 = inlined_call_operand.vmem [shape: f32[32,4], index: 1, kind: input, shape index: {}]   ;;  %s170_s0 = inlined_call_operand.vmem [shape: f32[8,32], index: 0, kind: input, shape index: {}]   ;;  %s171_s2 = inlined_call_operand.vmem [shape: f32[1,4], index: 2, kind: input, shape index: {}]   ;;  %s172_s3 = inlined_call_operand.vmem [shape: f32[8,4], index: 3, kind: output, shape index: {}]  }
   0x1   :  { %113 = vmatprep.subr.mxu0 %v126_v0  ;;  %v18_v1 = vld [vmem:[%s169_s1 + $0x18] sm:$0xff]  ;;  %v17_v2 = vld [vmem:[%s169_s1 + $0x10] sm:$0xff]  ;;  %121 = vmatprep.mubr.msk.f32.mxu0 %vm127_vm0, %v126_v0  ;;  %v16_v3 = vld [vmem:[%s169_s1 + $0x8] sm:$0xff] }
   0x2   :  { %114 = vmatpush3.msra.mxu0 %v18_v1  ;;  %v15_v4 = vld [vmem:[%s169_s1] sm:$0xff] }
   0x3   :  { %115 = vmatprep.subr.mxu0 %v126_v0  ;;  %v14_v5 = vld [vmem:[%s170_s0] sm:$0xff] }
   0x4   :  { %116 = vmatpush3.msra.mxu0 %v17_v2  ;;  %v106_v6 = vld [vmem:[%s171_s2] ss:$0 sm:$0xff] }
   0x5   :  { %117 = vmatprep.subr.mxu0 %v126_v0 }
   0x6   :  { %118 = vmatpush3.msra.mxu0 %v16_v3 }
   0x7   :  { %119 = vmatprep.subr.mxu0 %v126_v0 }
   0x8   :  { %120 = vmatpush3.msra.mxu0 %v15_v4 }
   0x9   :  { %122 = vmatmul.mubr.msk.f32.vlgmr.msra.gmra.mxu0 %vm26_vm1, %v14_v5 }
  0xc9   :  { %v96_v7 = vpop.f32.mrf.mxu0 }
  0xca   :  { %v97_v8 = vadd.f32 %v106_v6, %v96_v7 }
  0xcb   :  { %v123_v9 = vpop.f32.mrf.mxu0 }
  0xcc   :  { %101 = vst.msk [vmem:[%s172_s3] sm:$0xff] %vm100_vm2, %v97_v8 }

</bundles_post_ra>
